<compile_context>
chip_gen: v6e
topology: v6e:2x2x1
jax: 0.10.0
libtpu: 0.0.40
codegen_flags: <defaults>
</compile_context>

<pallas_src>
import jax
import jax.numpy as jnp
from jax import lax
from jax.experimental import pallas as pl
from jax.experimental.pallas import tpu as pltpu


# --------------------------------------------------------------------------- #
# helpers
# --------------------------------------------------------------------------- #
def _round_up(x, m):
    return ((x + m - 1) // m) * m


def _vmem_capacity_bytes():
    # Per-TensorCore VMEM: 64 MiB on v7x, 128 MiB on v5e/v6e.  Query when
    # possible; fall back to the v7x-safe 64 MiB.  (When the batch axis is
    # megacore-sharded the resident table must fit per-TC, which this is.)
    try:
        info = pltpu.get_tpu_info()
        cap = int(getattr(info, "vmem_capacity_bytes", 0))
        if cap > 0:
            return cap
    except Exception:
        pass
    return 64 * 1024 * 1024


def _is_v5e():
    try:
        kind = jax.devices()[0].device_kind.lower()
        return ("v5 lite" in kind) or ("v5e" in kind) or ("v5litepod" in kind)
    except Exception:
        return False


def _choose_tiles(b_flat, sublane, max_tile):
    """Pick a batch tile size (multiple of `sublane`) and padded batch size.

    Guarantees >= 2 grid tiles whenever the padded batch allows it, so the
    "parallel" batch axis actually spans both of v7x's TensorCores (neutral on
    v5e/v6e which have a single TC).
    """
    b_min = _round_up(max(b_flat, 1), sublane)
    if b_min <= max_tile:
        if b_min >= 2 * sublane:
            tile = _round_up(-(-b_min // 2), sublane)   # ceil(b_min/2) -> 2 tiles
        else:
            tile = b_min
    else:
        tile = max_tile
    b_padded = _round_up(max(b_flat, 1), tile)
    return tile, b_padded


# --------------------------------------------------------------------------- #
# Path A: one-hot MXU gather (table VMEM-resident)
# --------------------------------------------------------------------------- #
def _onehot_gather_kernel(idx_ref, w_ref, o_ref):
    # idx_ref : VMEM (B_padded, 1) int32 -- FULL flat index vector (resident)
    # w_ref   : VMEM (N, D_pad)          -- full embedding table (resident)
    # o_ref   : VMEM (TB, D_pad)         -- output tile for this grid step
    tb = o_ref.shape[0]
    n = w_ref.shape[0]
    start = pl.multiple_of(pl.program_id(0) * tb, 8)          # sublane-aligned
    idx = idx_ref[pl.ds(start, tb), :]                        # (TB, 1)
    row_ids = lax.broadcasted_iota(jnp.int32, (tb, n), 1)     # (TB, N)
    onehot = (idx == row_ids).astype(w_ref.dtype)             # (TB, N) MXU LHS
    # One MXU matmul per tile; accumulate in f32, cast on store.
    o_ref[...] = jnp.dot(
        onehot, w_ref[...], preferred_element_type=jnp.float32
    ).astype(o_ref.dtype)


# --------------------------------------------------------------------------- #
# Path B: scalar-prefetch row-gather (table stays in HBM)
# --------------------------------------------------------------------------- #
def _row_gather_kernel(idx_sref, w_hbm, o_ref, buf, sem):
    # idx_sref : SMEM (B_padded,) int32 -- scalar-prefetched flat indices
    # w_hbm    : HBM  (N, D)            -- raw table ref (memory_space=pl.ANY)
    # o_ref    : VMEM (TB, D)           -- output tile
    # buf      : VMEM (TB, D)           -- DMA landing buffer
    # sem      : DMA semaphore array, shape (1,)
    tb = o_ref.shape[0]
    base = pl.program_id(0) * tb

    def _issue(r, carry):
        row = idx_sref[base + r]
        pltpu.make_async_copy(
            w_hbm.at[pl.ds(row, 1)], buf.at[pl.ds(r, 1)], sem.at[0]
        ).start()
        return carry

    # Issue all row DMAs back-to-back (tile size is kept modest so the number
    # of outstanding descriptors per step stays small), then drain.
    lax.fori_loop(0, tb, _issue, 0)

    def _drain(r, carry):
        # Same-sized descriptor; each wait retires one row copy.
        pltpu.make_async_copy(
            w_hbm.at[pl.ds(0, 1)], buf.at[pl.ds(0, 1)], sem.at[0]
        ).wait()
        return carry

    lax.fori_loop(0, tb, _drain, 0)
    o_ref[...] = buf[...]


# --------------------------------------------------------------------------- #
# wrapper / dispatch
# --------------------------------------------------------------------------- #
def splitter_embedding_forward(persona_batch, persona_embedding_weight, *,
                               max_tile_rows=1024, gather_tile_rows=256,
                               force_path=None):
    """JAX/Pallas equivalent of SplitterEmbedding.forward (embedding gather).

    force_path in {None, "onehot", "gather", "xla"} overrides dispatch.
    """
    idx_shape = persona_batch.shape
    n, d = persona_embedding_weight.shape
    w_dtype = jnp.dtype(persona_embedding_weight.dtype)
    itemsize = w_dtype.itemsize

    # Clip indices in-range (PyTorch would raise on OOB; documented divergence).
    idx_flat = jnp.clip(persona_batch.reshape(-1).astype(jnp.int32), 0, n - 1)
    b_flat = int(idx_flat.shape[0])

    def _xla():
        out = jnp.take(persona_embedding_weight, idx_flat, axis=0)
        return out.reshape(idx_shape + (d,))

    if force_path == "xla":
        return _xla()
    if force_path is None and b_flat * d * itemsize < (1 << 16):
        return _xla()          # tiny problem: pallas_call launch overhead wins

    vmem_cap = _vmem_capacity_bytes()
    budget = int(vmem_cap * 0.85)          # ~15% headroom for Mosaic scratch
    sublane = 8 * max(1, 4 // itemsize)    # f32 -> 8, bf16 -> 16, int8 -> 32

    float_ok = w_dtype in (jnp.dtype(jnp.float32), jnp.dtype(jnp.bfloat16))
    # MXU one-hot is O(N*D) work per batch tile; crossover to DMA gather is
    # lower on v5e (4x128^2 MXU, no fast f32 path).
    onehot_max_n = 1024 if _is_v5e() else 4096

    if force_path == "onehot":
        use_onehot = True
    elif force_path == "gather":
        use_onehot = False
    else:
        use_onehot = float_ok and n <= onehot_max_n
    if use_onehot and not float_ok:
        use_onehot = False     # v7x MXU has no integer mode; route to gather

    # ---------------- Path A: one-hot MXU gather ---------------------------
    def _onehot_path():
        d_pad = _round_up(d, 128)          # lane-dense output stores
        w_in = persona_embedding_weight
        if d_pad != d:
            w_in = jnp.pad(w_in, ((0, 0), (0, d_pad - d)))

        max_tile = max(sublane, (max_tile_rows // sublane) * sublane)
        tile_rows, b_padded = _choose_tiles(b_flat, sublane, max_tile)

        def _needed(tr, bp):
            table = 2 * n * d_pad * itemsize   # resident table (assume the
                                               # pipeliner double-buffers the
                                               # invariant block: conservative)
            idxb = 2 * bp * 4                  # resident index vector
            outb = 2 * tr * d_pad * itemsize   # double-buffered output tile
            inter = tr * n * (4 + itemsize)    # iota (i32) + one-hot MXU LHS
            accb = tr * d_pad * 4              # f32 matmul result before cast
            return table + idxb + outb + inter + accb + (2 << 20)

        needed = _needed(tile_rows, b_padded)
        while needed > budget:                 # shrink the batch tile to fit
            new_tile = max(sublane, ((tile_rows // 2) // sublane) * sublane)
            if new_tile == tile_rows:
                break
            tile_rows = new_tile
            b_padded = _round_up(b_flat, tile_rows)
            needed = _needed(tile_rows, b_padded)
        if needed > budget and force_path != "onehot":
            return None                        # too big resident -> row gather

        pad = b_padded - b_flat
        idx_p = idx_flat if pad == 0 else jnp.concatenate(
            [idx_flat, jnp.zeros((pad,), jnp.int32)], axis=0)
        idx2d = idx_p.reshape(b_padded, 1)

        vmem_limit = int(min(max(needed, 32 << 20), int(vmem_cap * 0.9)))

        # TODO(synk): single-buffer the invariant table block (pl.Buffered(1)
        # or a one-time manual copy) to halve the dominant VMEM term; the
        # budget conservatively assumes 2x today.
        # TODO(synk): tile the contraction over N (second "arbitrary" grid
        # axis + f32 accumulator) if a large-but-resident table should ever
        # stay on the MXU path instead of the row-gather path.
        out = pl.pallas_call(
            _onehot_gather_kernel,
            out_shape=jax.ShapeDtypeStruct((b_padded, d_pad), w_dtype),
            grid=(b_padded // tile_rows,),
            in_specs=[
                # full index vector, VMEM-resident across the grid
                pl.BlockSpec((b_padded, 1), lambda i: (0, 0)),
                # full embedding table, VMEM-resident across the grid
                pl.BlockSpec((n, d_pad), lambda i: (0, 0)),
            ],
            out_specs=pl.BlockSpec((tile_rows, d_pad), lambda i: (i, 0)),
            compiler_params=pltpu.CompilerParams(
                dimension_semantics=("parallel",),
                vmem_limit_bytes=vmem_limit),
        )(idx2d, w_in)
        out = out[:b_flat, :d]
        return out.reshape(idx_shape + (d,))

    if use_onehot:
        res = _onehot_path()
        if res is not None:
            return res

    # ---------------- Path B: scalar-prefetch row gather --------------------
    max_tile_g = max(sublane, (gather_tile_rows // sublane) * sublane)
    tile_rows, b_padded = _choose_tiles(b_flat, sublane, max_tile_g)
    pad = b_padded - b_flat
    idx_p = idx_flat if pad == 0 else jnp.concatenate(
        [idx_flat, jnp.zeros((pad,), jnp.int32)], axis=0)

    needed_g = 3 * tile_rows * d * itemsize + (2 << 20)   # 2x out tile + buf
    vmem_limit_g = int(min(max(needed_g, 32 << 20), int(vmem_cap * 0.9)))

    out = pl.pallas_call(
        _row_gather_kernel,
        out_shape=jax.ShapeDtypeStruct((b_padded, d), w_dtype),
        grid_spec=pltpu.PrefetchScalarGridSpec(
            num_scalar_prefetch=1,                 # flat indices -> SMEM
            grid=(b_padded // tile_rows,),
            in_specs=[pl.BlockSpec(memory_space=pl.ANY)],   # table stays in HBM
            out_specs=pl.BlockSpec((tile_rows, d), lambda i, idx: (i, 0)),
            scratch_shapes=[
                pltpu.VMEM((tile_rows, d), w_dtype),
                pltpu.SemaphoreType.DMA((1,)),
            ]),
        compiler_params=pltpu.CompilerParams(
            dimension_semantics=("parallel",),
            vmem_limit_bytes=vmem_limit_g),
    )(idx_p, persona_embedding_weight)
    out = out[:b_flat]
    return out.reshape(idx_shape + (d,))


# --------------------------------------------------------------------------- #
# self-test
# --------------------------------------------------------------------------- #
if __name__ == "__main__":
    key = jax.random.PRNGKey(0)
    k_w, k_idx, k_w2, k_idx2 = jax.random.split(key, 4)

    persona_node_count = 40
    embedding_dimension = 128

    # Deterministic "initial_persona_embedding" (module default would be ones;
    # random values so the gather is actually exercised).
    persona_weight = jax.random.normal(
        k_w, (persona_node_count, embedding_dimension), dtype=jnp.float32)
    persona_batch = jax.random.randint(
        k_idx, (2, 8), minval=0, maxval=persona_node_count, dtype=jnp.int32)

    # Path A: one-hot MXU gather (force past the tiny-size XLA fallback).
    out_a = jax.block_until_ready(
        splitter_embedding_forward(persona_batch, persona_weight,
                                   force_path="onehot"))
    ref_a = persona_weight[persona_batch]
    assert out_a.shape == (2, 8, embedding_dimension)
    assert jnp.allclose(out_a, ref_a, atol=1e-5), "one-hot path mismatch"

    # Path A with a non-lane-aligned D (exercises the D -> 128 pad/trim).
    w96 = jax.random.normal(k_w2, (persona_node_count, 96), dtype=jnp.float32)
    out_a96 = jax.block_until_ready(
        splitter_embedding_forward(persona_batch, w96, force_path="onehot"))
    assert out_a96.shape == (2, 8, 96)
    assert jnp.allclose(out_a96, w96[persona_batch], atol=1e-5), \
        "one-hot path (padded D) mismatch"

    # Path B: scalar-prefetch row gather (primary large-N / non-float path).
    big_n = 300
    w_big = jax.random.normal(
        k_w2, (big_n, embedding_dimension), dtype=jnp.float32)
    batch_b = jax.random.randint(
        k_idx2, (3, 5), minval=0, maxval=big_n, dtype=jnp.int32)
    out_b = jax.block_until_ready(
        splitter_embedding_forward(batch_b, w_big, force_path="gather"))
    assert out_b.shape == (3, 5, embedding_dimension)
    assert jnp.allclose(out_b, w_big[batch_b]), "row-gather path mismatch"

    # TODO(synk): AdaptiveLogSoftmaxWithLoss heads (used only in .loss, not in
    # forward) are not implemented.
    print("KERNEL_OK")
</pallas_src>

<mosaic_0001>
module attributes {stable_mosaic.version = 11 : i64} {
  func.func @_onehot_gather_kernel(%arg0: i32, %arg1: memref<16x1xi32, #tpu.memory_space<vmem>>, %arg2: memref<40x128xf32, #tpu.memory_space<vmem>>, %arg3: memref<8x128xf32, #tpu.memory_space<vmem>>) attributes {dimension_semantics = [#tpu.dimension_semantics<parallel>], iteration_bounds = array<i64: 2>, scalar_prefetch = 0 : i64, scratch_operands = 0 : i64, tpu.core_type = #tpu.core_type<tc>, window_params = [{pipeline_mode = #tpu.pipeline_mode<synchronous>, transform_indices = @transform_0, window_bounds = array<i64: 16, 1>}, {pipeline_mode = #tpu.pipeline_mode<synchronous>, transform_indices = @transform_1, window_bounds = array<i64: 40, 128>}, {transform_indices = @transform_2, window_bounds = array<i64: 8, 128>}]} {
    %c8_i32 = arith.constant 8 : i32
    %0 = arith.muli %arg0, %c8_i32 : i32
    %1 = tpu.assume_multiple %0, 8 : i32
    %2 = arith.index_cast %1 : i32 to index
    %c0 = arith.constant 0 : index
    %3 = vector.load %arg1[%2, %c0] : memref<16x1xi32, #tpu.memory_space<vmem>>, vector<8x1xi32>
    %4 = tpu.iota {dimensions = array<i32: 1>} : vector<8x40xi32>
    %5 = vector.broadcast %3 : vector<8x1xi32> to vector<8x40xi32>
    %6 = arith.cmpi eq, %5, %4 : vector<8x40xi32>
    %7 = arith.extui %6 : vector<8x40xi1> to vector<8x40xi32>
    %8 = arith.sitofp %7 : vector<8x40xi32> to vector<8x40xf32>
    %c0_0 = arith.constant 0 : index
    %c0_1 = arith.constant 0 : index
    %9 = vector.load %arg2[%c0_0, %c0_1] : memref<40x128xf32, #tpu.memory_space<vmem>>, vector<40x128xf32>
    %cst = arith.constant dense<0.000000e+00> : vector<8x128xf32>
    %10 = tpu.matmul %8, %9, %cst {dimension_numbers = #tpu.dot_dimension_numbers<[1], [0], [0], [1], [0, 0, 1, 1], [], []>} : vector<8x40xf32>, vector<40x128xf32>, vector<8x128xf32> -> vector<8x128xf32>
    %c0_2 = arith.constant 0 : index
    %c0_3 = arith.constant 0 : index
    %11 = vector.load %arg3[%c0_2, %c0_3] : memref<8x128xf32, #tpu.memory_space<vmem>>, vector<8x128xf32>
    tpu.vector_store %arg3[%c0_2, %c0_3], %10 {strides = array<i32>} : memref<8x128xf32, #tpu.memory_space<vmem>>, vector<8x128xf32>,
    return
  }
  func.func @transform_0(%arg0: i32) -> (i32, i32) {
    %c0_i32 = arith.constant 0 : i32
    %c0_i32_0 = arith.constant 0 : i32
    %c0_i32_1 = arith.constant 0 : i32
    return %c0_i32, %c0_i32_0 : i32, i32
  }
  func.func @transform_1(%arg0: i32) -> (i32, i32) {
    %c0_i32 = arith.constant 0 : i32
    %c0_i32_0 = arith.constant 0 : i32
    %c0_i32_1 = arith.constant 0 : i32
    return %c0_i32, %c0_i32_0 : i32, i32
  }
  func.func @transform_2(%arg0: i32) -> (i32, i32) {
    %c0_i32 = arith.constant 0 : i32
    %c0_i32_0 = arith.constant 0 : i32
    return %arg0, %c0_i32 : i32, i32
  }
}

</mosaic_0001>

<bundles_post_ra>
// kernel: tpu_custom_call.1
= control target key start
LH: loop header
LB: loop body
LE: loop exit
PB: predicated region body
PF: predicated region fallthrough
CT: control target
= control target key end

     0   :  { %7 = vsyncpa [#allocation3], 0  ;;  %s621_s0 = inlined_call_operand.vmem [shape: s32[16,1], index: 0, kind: input, shape index: {}]   ;;  %s622_s1 = inlined_call_operand.hbm [shape: f32[40,128], index: 1, kind: input, shape index: {}]   ;;  %s623_s2 = inlined_call_operand.hbm [shape: f32[16,128], index: 2, kind: output, shape index: {}]  }
   0x1   :  { %8 = vsyncpa [#allocation4], 0 }
   0x2   :  { %10 = vsyncpa [#allocation4 + $0x1], 0  ;;  %s505_s9 = smov 0   ;;  %s507_s10 = smov 0  }
   0x3   :  { %s509_s11 = smov 0   ;;  %s511_s12 = smov 0  }
   0x4 LB: > { %s526_s13 = sadd.s32 4294967295, %s481_s12   ;;  %s303_s14 = sadd.s32 4294967294, %s481_s12   ;;  %s481_s12 = sphi %s511_s12, %s631_s12   ;;  %s477_s11 = sphi %s509_s11, %s630_s11   ;;  %s473_s10 = sphi %s507_s10, %s629_s10   ;;  %s469_s9 = sphi %s505_s9, %s628_s9  }
   0x5   : > { %s530_s15 = sadd.s32 1, %s481_s12   ;;  %s65_s16 = sadd.s32 1, %s477_s11 }
   0x6   : > { %s62_s17 = ssub.s32 %s481_s12, %s530_s15  ;;  %p75_p0 = scmp.ne.s32.totalorder %s477_s11, %s473_s10 }
   0x7   : > { %p63_p1 = scmp.eq.s32.totalorder %s62_s17, 0  ;;  %p76_p2 = scmp.eq.s32.totalorder %s526_s13, 1 }
   0x8   : > { %p81_p3 = scmp.ne.s32.totalorder %s473_s10, %s469_s9  ;;  %p82_p4 = scmp.eq.s32.totalorder %s303_s14, 1 }
   0x9   : > { %s541_s18 = scalar_select %p63_p1, %s477_s11, %s65_s16  }
   0xa   : > { %p543_p5 = por %p76_p2, %p75_p0  ;;  %p547_p6 = por %p82_p4, %p81_p3 }
   0xb   : > { %p304_p7 = scmp.ge.s32.totalorder %s481_s12, 1  ;;  %p89_p8 = scmp.lt.s32.totalorder %s481_s12, 3 }
   0xc   : > { %s625_s20 = scalar_select %p547_p6, 1, 0 }
   0xd   : > { %p349_p9 = scmp.eq.s32.totalorder %s526_s13, 0  ;;  %p554_p10 = pnand %p304_p7, %p89_p8 }
   0xe   : > { %s483_s22 = smov [#allocation2]  }
   0xf   : > { %s104_s23 = sshll.u32 %s483_s22, 4  ;;  %p341_p11 = pneg %p554_p10  ;;  %s105_s23 = int_to_ptr.vmem [resolvable:$true] %s104_s23 }
  0x10   : > { %s402_s24 = scalar_lea.vmem %s105_s23, 640  ;;  %p410_p3 = scmp.lt.s32.totalorder %s105_s23, %s105_s23 }
  0x11   : > { %p342_p12 = pnand %p349_p9, %p341_p11  ;;  %p403_p0 = scmp.ne.s32.totalorder %s105_s23, %s402_s24 }
  0x12   : > { %p411_p4 = scmp.lt.s32.totalorder %s402_s24, %s402_s24 }
  0x13   : > { %p393_p13 = pneg %p342_p12 }
  0x14   : > { %p412_p6 = por %p411_p4, %p410_p3 }
  0x15   : > { %p405_p1 = pnand %p403_p0, %p393_p13 }
  0x17   : > { %p406_p2 = pneg %p405_p1 }
  0x19   : > { %p413_p7 = pnand %p412_p6, %p406_p2 }
  0x1b   : > { %416 = shalt.err (!%p413_p7)
}
  0x1c   : > { %s484_s25 = smov 128   ;;  %s485_s26 = smov 8  }
  0x1d   : > { %344 = dma.hbm_to_vmem [thread:$0]  (!%p342_p12), %s622_s1, 640, %s105_s23, [#allocation3], %s484_s25, %s484_s25, %s485_s26  }
  0x1e   : > { %120 = sbr.rel (%p554_p10) target bundleno = 372 (0x174), region = 28 }
  0x23   : > { %460 = dma.done.wait (%p349_p9), [#allocation3], 640  }
  0x24   : > { %462 = vsyncadd (%p349_p9), [#allocation3], 4294966656  ;;  %v486_v0 = vmov 0   ;;  %s309_s29 = sshll.u32 %s526_s13, 3  ;;  %v487_v1 = vmov 0.0   ;;  %vm488_vm0 = vmmov 0   ;;  %v140_v8 = vlaneseq }
  0x25   : > { %390 = vset.pattern.permute.xlu0 %v486_v0  ;;  %322 = vmatprep.subr.mxu0 %v487_v1  ;;  %s138_s4 = scalar_lea.vmem %s621_s0, %s309_s29  ;;  %v152_v3 = vld [vmem:[#allocation2 + $0x20] sm:$0xff]  ;;  %v151_v4 = vld [vmem:[#allocation2 + $0x18] sm:$0xff]  ;;  %v150_v5 = vld [vmem:[#allocation2 + $0x10] sm:$0xff]  ;;  %vm153_vm1 = vcmask 326656   ;;  %s134_s5 = sand.u32 1, %s473_s10  }
  0x26   : > { %332 = vmatprep.mubr.msk.f32.mxu0 %vm488_vm0, %v487_v1  ;;  %v139_v2 = vld [vmem:[%s138_s4] sm:$0xff]  ;;  %323 = vmatpush3.msra.mxu0 %v152_v3  ;;  %v149_v6 = vld [vmem:[#allocation2 + $0x8] sm:$0xff]  ;;  %v141_v9 = vand.u32 127, %v140_v8  ;;  %s308_s6 = sshll.u32 %s134_s5, 3  ;;  %s313_s14 = sshll.u32 %s526_s13, 7 }
  0x27   : > { %143 = vperm.xlu0 %390, %v139_v2   ;;  %324 = vmatprep.subr.mxu0 %v487_v1  ;;  %v148_v7 = vld [vmem:[#allocation2] sm:$0xff]  ;;  %s136_s7 = scalar_lea.vmem [#allocation5], %s308_s6  ;;  %s582_s21 = scalar_lea.hbm %s623_s2, %s313_s14 }
  0x28   : > { %325 = vmatpush3.msra.mxu0 %v151_v4  ;;  %s242_s8 = sshll.u32 %s136_s7, 4  ;;  %s229_s22 = scalar_lea.sflag [#allocation4], %s134_s5  ;;  %s577_s8 = int_to_ptr.vmem [resolvable:$true] %s242_s8 }
  0x29   : > { %326 = vmatprep.subr.mxu0 %v487_v1  ;;  %s417_s23 = scalar_lea.vmem %s577_s8, 128  ;;  %s489_s13 = smov [#allocation5]  }
  0x2a   : > { %327 = vmatpush3.msra.mxu0 %v150_v5  ;;  %p418_p6 = scmp.ne.s32.totalorder %s577_s8, %s417_s23  ;;  %s421_s24 = sshll.u32 %s489_s13, 4  ;;  %s422_s24 = int_to_ptr.vmem [resolvable:$false] %s421_s24 }
  0x2b   : > { %328 = vmatprep.subr.mxu0 %v487_v1  ;;  %s423_s25 = scalar_lea.vmem %s422_s24, 256  ;;  %p424_p10 = scmp.lt.s32.totalorder %s577_s8, %s422_s24 }
  0x2c   : > { %329 = vmatpush3.msra.mxu0 %v149_v6  ;;  %p419_p8 = pnand %p418_p6, %p543_p5  ;;  %p425_p11 = scmp.lt.s32.totalorder %s423_s25, %s417_s23 }
  0x2d   : > { %330 = vmatprep.subr.mxu0 %v487_v1 }
  0x2e   : > { %331 = vmatpush3.msra.mxu0 %v148_v7  ;;  %p420_p9 = pneg %p419_p8  ;;  %p426_p12 = por %p425_p11, %p424_p10 }
  0x30   : > { %p427_p13 = pnand %p426_p12, %p420_p9 }
  0xa2   : > { %v144_v10 = vpop.permute.xlu0 %143 }
  0xa3   : > { %vm145_vm2 = vcmp.eq.s32.totalorder %v144_v10, %v141_v9 }
  0xa4   : > { %v310_v11 = vsel %vm145_vm2, 1.0, %v487_v1 }
  0xa5   : > { %333 = vmatmul.mubr.msk.f32.vlgmr.msra.gmra.mxu0 %vm153_vm1, %v310_v11 }
 0x165   : > { %v223_v12 = vpop.f32.mrf.mxu0 }
 0x166   : > { %227 = vst [vmem:[%s136_s7] sm:$0xff] %v223_v12 }
 0x167   : > { %v334_v13 = vpop.f32.mrf.mxu0 }
 0x168   : > { %430 = shalt.err (!%p427_p13)
}
 0x169   : > { %s431_s26 = scalar_lea.hbm %s582_s21, 128  ;;  %s435_s29 = scalar_lea.hbm %s623_s2, 256 }
 0x16a   : > { %p432_p0 = scmp.ne.s32.totalorder %s582_s21, %s431_s26  ;;  %p436_p3 = scmp.lt.s32.totalorder %s582_s21, %s623_s2 }
 0x16b   : > { %p437_p4 = scmp.lt.s32.totalorder %s435_s29, %s431_s26 }
 0x16c   : > { %p433_p1 = pnand %p432_p0, %p543_p5 }
 0x16d   : > { %p438_p7 = por %p437_p4, %p436_p3 }
 0x16e   : > { %p434_p2 = pneg %p433_p1 }
 0x170   : > { %p439_p6 = pnand %p438_p7, %p434_p2 }
 0x172   : > { %442 = shalt.err (!%p439_p6)
}
 0x173   : > { %339 = dma.vmem_to_hbm [thread:$0]  (%p543_p5), %s577_s8, 128, %s582_s21, %s229_s22  }
 0x174 PF: > { %p351_p8 = scmp.ge.s32.totalorder %s481_s12, 2  ;;  %s254_s4 = sand.u32 1, %s469_s9  }
 0x175   : > { %p627_p9 = scmp.ne.s32.totalorder %s625_s20, 0  ;;  %s255_s5 = scalar_lea.sflag [#allocation4], %s254_s4 }
 0x177   : > { %p346_p10 = pnand %p351_p8, %p627_p9 }
 0x179   : > { %p347_p11 = pneg %p346_p10 }
 0x17b   : > { %464 = dma.done.wait (%p347_p11), %s255_s5, 128  }
 0x17c   : > { %466 = vsyncadd (%p347_p11), %s255_s5, 4294967168  ;;  %p13_p12 = scmp.ge.s32.totalorder %s530_s15, 4   ;;  %s628_s9 = smov %s473_s10 }
 0x17d   : > { %s629_s10 = smov %s477_s11  ;;  %s630_s11 = smov %s541_s18 }
 0x17e   : > { %s631_s12 = smov %s530_s15  ;;  %15 = sbr.rel (!%p13_p12) target bundleno = 4 (0x4), region = 66 }
 0x183   :  { %260 = vsyncpa [#allocation3], 1 }
 0x184   :  { %262 = vsyncpa [#allocation3 + $0x1], 1 }
 0x185   :  { %263 = vsyncpa [#allocation4], 1 }
 0x186   :  { %265 = vsyncpa [#allocation4 + $0x1], 1 }

</bundles_post_ra>
